<compile_context>
chip_gen: v7x
topology: tpu7x:2x2x1
jax: 0.10.0
libtpu: 0.0.40
codegen_flags: <defaults>
</compile_context>

<pallas_src>
import functools

import jax
import jax.numpy as jnp
from jax import lax
from jax.experimental import pallas as pl
from jax.experimental.pallas import tpu as pltpu


# ----------------------------------------------------------------------------
# Kernel: teacher-forced logits, vocab-tiled + batch-folded
#   pred                 = emb_flat @ W[:, v*tile_v:(v+1)*tile_v]   (MXU, f32 acc)
#   logits[b, 0,  vtile] = -inf everywhere, 1e18 at bos_id
#   logits[b, 1:, vtile] = pred rows for batch b
# ----------------------------------------------------------------------------
def _tf_logits_kernel(emb_ref, w_ref, out_ref, *, bos_id, tile_v, tile_b, lm1):
    # emb_ref: (tile_b*Lm1, H)   w_ref: (H, tile_v)   out_ref: (tile_b, L, tile_v)
    v_idx = pl.program_id(0)
    col = v_idx * tile_v + lax.broadcasted_iota(jnp.int32, (1, tile_v), 1)
    bos_row = jnp.where(col == bos_id, jnp.float32(1e18),
                        jnp.float32(-jnp.inf)).astype(out_ref.dtype)

    # One MXU matmul over the whole folded-batch block (M = tile_b * Lm1).
    pred = jnp.dot(emb_ref[...], w_ref[...],
                   preferred_element_type=jnp.float32).astype(out_ref.dtype)

    for bb in range(tile_b):  # static unroll; the picker keeps tile_b small
        # Build the full (L, tile_v) block in registers and issue ONE aligned
        # full-block store (no rolled/masked sublane-offset stores).
        block = jnp.concatenate(
            [bos_row, pred[bb * lm1:(bb + 1) * lm1, :]], axis=0)
        out_ref[bb, :, :] = block


# ----------------------------------------------------------------------------
# VMEM-budget-aware tile selection
# ----------------------------------------------------------------------------
def _vmem_need_bytes(tile_b, tile_v, w_buffers, *, L, lm1, H,
                     emb_bytes, w_bytes, out_bytes):
    w = w_buffers * H * tile_v * w_bytes          # W tile (1 or 2 buffers)
    emb = 2 * tile_b * lm1 * H * emb_bytes        # emb block, double-buffered
    out = 2 * tile_b * L * tile_v * out_bytes     # out block, double-buffered
    return w + emb + out


def _default_vmem_limit_bytes():
    phys = None
    try:
        info = pltpu.get_tpu_info()
        phys = getattr(info, "vmem_capacity_bytes", None)
    except Exception:
        phys = None
    if not phys:
        return 48 * 1024 * 1024          # safe on v5e / v6e / v7x
    # ~96 MiB on v5e/v6e (128 MiB phys), ~48 MiB on v7x (64 MiB phys)
    return int(min(phys * 3 // 4, 100 * 1024 * 1024))


def teacher_forced_logits(emb, w_out, *, bos_id, tile_v=None, tile_b=None,
                          out_dtype=jnp.float32, vmem_limit_bytes=None):
    B, Lm1, H = emb.shape
    H2, V = w_out.shape
    assert H == H2
    L = Lm1 + 1

    # Pad vocab to a lane multiple so every tile is (8,128)-clean.
    Vp = ((V + 127) // 128) * 128
    if Vp != V:
        # TODO(synk): a masked remainder tile would avoid this pad + final slice.
        w_out = jnp.pad(w_out, ((0, 0), (0, Vp - V)))

    if vmem_limit_bytes is None:
        vmem_limit_bytes = _default_vmem_limit_bytes()
    budget = int(vmem_limit_bytes * 0.9)   # headroom for Mosaic internal scratch

    emb_bytes = jnp.dtype(emb.dtype).itemsize
    w_bytes = jnp.dtype(w_out.dtype).itemsize
    out_bytes = jnp.dtype(out_dtype).itemsize

    def fits(tb, tv, wb):
        return _vmem_need_bytes(tb, tv, wb, L=L, lm1=Lm1, H=H,
                                emb_bytes=emb_bytes, w_bytes=w_bytes,
                                out_bytes=out_bytes) <= budget

    # Candidate tiles (descending). tile_v: 128-multiple divisor of Vp.
    # tile_b: divisor of B whose flattened emb block keeps sublane alignment.
    tv_cands = [tv for tv in range(Vp, 127, -128) if Vp % tv == 0] or [Vp]
    tb_all = [tb for tb in range(B, 0, -1)
              if B % tb == 0 and ((tb * Lm1) % 8 == 0 or tb == B)]
    tb_cands = [tb for tb in tb_all if tb * Lm1 <= 512] or tb_all[-1:]

    if tile_v is None or tile_b is None:
        tv_opts = [tile_v] if tile_v is not None else tv_cands
        tb_opts = [tile_b] if tile_b is not None else tb_cands
        tile_v, tile_b = tv_opts[-1], tb_opts[-1]   # smallest as fallback
        done = False
        for tv in tv_opts:          # biggest tile_v first: fewer emb re-reads
            for tb in tb_opts:      # then fold batch: MXU fill + fewer steps
                if fits(tb, tv, 2) or fits(tb, tv, 1):
                    tile_v, tile_b = tv, tb
                    done = True
                    break
            if done:
                break

    assert Vp % tile_v == 0 and tile_v % 128 == 0
    assert B % tile_b == 0
    w_buffers = 2 if fits(tile_b, tile_v, 2) else 1

    num_v = Vp // tile_v
    num_b = B // tile_b
    emb_flat = emb.reshape(B * Lm1, H)   # contiguous -> free reshape

    w_spec_kwargs = {}
    if w_buffers == 1:
        # Single-buffer the largest operand: one exposed W DMA per v-tile,
        # amortized over num_b inner steps (v7x small-VMEM fallback).
        w_spec_kwargs["pipeline_mode"] = pl.Buffered(1)

    kernel = functools.partial(_tf_logits_kernel, bos_id=bos_id,
                               tile_v=tile_v, tile_b=tile_b, lm1=Lm1)
    logits = pl.pallas_call(
        kernel,
        out_shape=jax.ShapeDtypeStruct((B, L, Vp), out_dtype),
        # V outer, batch inner: the W tile's block index is constant across the
        # inner axis, so it stays VMEM-resident for all folded-batch steps.
        grid=(num_v, num_b),
        in_specs=[
            pl.BlockSpec((tile_b * Lm1, H), lambda v, b: (b, 0)),
            pl.BlockSpec((H, tile_v), lambda v, b: (0, v), **w_spec_kwargs),
        ],
        out_specs=pl.BlockSpec((tile_b, L, tile_v), lambda v, b: (b, 0, v)),
        compiler_params=pltpu.CompilerParams(
            dimension_semantics=("parallel", "parallel"),
            vmem_limit_bytes=int(vmem_limit_bytes),
        ),
    )(emb_flat, w_out)

    if Vp != V:
        logits = logits[:, :, :V]
    return logits


# ----------------------------------------------------------------------------
# Sampler wrapper (mirrors TeacherForcedSampler.forward)
# ----------------------------------------------------------------------------
class TeacherForcedSamplerPallas:
    """Teacher-forced sampler; decoder "model" = embedding lookup + vocab proj."""

    def __init__(self, config, tokenizer, training=False, *, tile_v=None,
                 tile_b=None, logits_dtype=jnp.float32):
        self.config = config
        self.tokenizer = tokenizer
        self.training = training
        self.tile_v = tile_v
        self.tile_b = tile_b
        self.logits_dtype = logits_dtype

    def forward(self, model_params, batch, tgt_field, dropout_rng=None):
        # curr_batch_size from first non-'_text' field (mirrors the torch code)
        non_text = [k for k in batch if not k.endswith("_text")]
        _curr_batch_size = batch[non_text[0]].shape[0]

        tgt = batch[tgt_field]                                   # (B, L) int32
        max_output_len = tgt.shape[1]
        output = tgt[:, : max_output_len - 1]

        # TODO(synk): prepend_eos / prepend_langcode (BART/MBART) token-prepend
        #             paths not implemented (config defaults keep them False).

        p_drop = self.config["training"]["data"].get("token_dropout", 0)
        if p_drop > 0 and self.training:
            # Plain-JAX select: XLA fuses it with the embedding gather below;
            # a standalone pallas_call here only added a launch + HBM traffic.
            rand = jax.random.uniform(dropout_rng, output.shape, dtype=jnp.float32)
            drop = (rand < jnp.float32(p_drop)) & (output != self.tokenizer["pad_id"])
            output = jnp.where(drop,
                               jnp.full_like(output, self.tokenizer["mask_id"]),
                               output)

        # Decoder "model": embedding lookup (glue) + vocab projection (Pallas).
        emb_table, w_out = model_params          # kept bf16 at rest: no cast pass
        emb = jnp.take(emb_table, output, axis=0)                # (B, L-1, H)
        # TODO(synk): folding this gather into the logits kernel via
        #             PrefetchScalarGridSpec (tokens as scalar prefetch) would
        #             remove the HBM materialization of `emb`.

        logits = teacher_forced_logits(
            emb, w_out,
            bos_id=self.tokenizer["bos_id"],
            tile_v=self.tile_v, tile_b=self.tile_b,
            out_dtype=self.logits_dtype,
        )                                                        # (B, L, V)

        memory = {}
        return output, logits, None, memory


if __name__ == "__main__":
    B, L, V, H = 2, 9, 512, 128   # Lm1 = 8 keeps the folded emb block sublane-aligned

    config = {
        "eval": {"data": {"prepend_eos": False, "prepend_langcode": False}},
        "training": {"data": {"token_dropout": 0.1}},
        "prepro": {"vocab_size": V},
    }
    tokenizer = {"bos_id": 1, "eos_id": 2, "pad_id": 0, "mask_id": 3}

    key = jax.random.PRNGKey(0)
    k_tok, k_emb, k_w, k_drop = jax.random.split(key, 4)

    batch = {
        "target_ids": jax.random.randint(k_tok, (B, L), 0, V, dtype=jnp.int32),
        "target_text": None,   # ignored, mimics '_text' filtering in torch code
    }
    # Params stored bf16 at rest (no per-call boundary cast of W / emb_table).
    emb_table = jax.random.normal(k_emb, (V, H), dtype=jnp.float32).astype(jnp.bfloat16)
    w_out = jax.random.normal(k_w, (H, V), dtype=jnp.float32).astype(jnp.bfloat16)

    # Run 1: f32 logits (exact torch-parity BOS row), explicit tile_v=256 so the
    # vocab grid axis is exercised (grid = (2, 1)).
    sampler = TeacherForcedSamplerPallas(config, tokenizer, training=True,
                                         tile_v=256, logits_dtype=jnp.float32)
    output, logits, _, memory = sampler.forward(
        (emb_table, w_out), batch, "target_ids", dropout_rng=k_drop)
    jax.block_until_ready((output, logits))

    assert output.shape == (B, L - 1)
    assert logits.shape == (B, L, V)

    # token-dropout semantics: tokens kept or replaced by mask_id; pads kept.
    tgt_trunc = batch["target_ids"][:, : L - 1]
    assert bool(jnp.all((output == tgt_trunc) | (output == tokenizer["mask_id"])))
    assert bool(jnp.all(jnp.where(tgt_trunc == tokenizer["pad_id"],
                                  output == tgt_trunc, True)))

    # logits vs plain-JAX reference with the same bf16 inputs / f32 accumulation
    emb_ref = jnp.take(emb_table, output, axis=0)
    pred_ref = jnp.einsum("blh,hv->blv", emb_ref, w_out,
                          preferred_element_type=jnp.float32)
    assert jnp.allclose(logits[:, 1:, :], pred_ref, atol=1e-2, rtol=1e-2)
    bos = tokenizer["bos_id"]
    col = jnp.arange(V)
    assert bool(jnp.all(logits[:, 0, bos] == jnp.float32(1e18)))
    assert bool(jnp.all(jnp.isneginf(logits[:, 0, :][:, col != bos])))

    # Run 2: bf16 logits + fully automatic (VMEM-budget) tiling.
    sampler16 = TeacherForcedSamplerPallas(config, tokenizer, training=False,
                                           logits_dtype=jnp.bfloat16)
    out16, logits16, _, _ = sampler16.forward((emb_table, w_out), batch, "target_ids")
    jax.block_until_ready(logits16)
    assert logits16.dtype == jnp.bfloat16 and logits16.shape == (B, L, V)
    assert bool(jnp.all(logits16[:, 0, bos].astype(jnp.float32) > 1e17))
    assert bool(jnp.all(jnp.isneginf(
        logits16[:, 0, :][:, col != bos].astype(jnp.float32))))
    pred_ref16 = jnp.einsum("blh,hv->blv",
                            jnp.take(emb_table, out16, axis=0), w_out,
                            preferred_element_type=jnp.float32)
    assert jnp.allclose(logits16[:, 1:, :].astype(jnp.float32), pred_ref16,
                        atol=0.1, rtol=5e-2)

    print("KERNEL_OK")
</pallas_src>

<mosaic_0001>
module attributes {stable_mosaic.version = 11 : i64} {
  func.func @_tf_logits_kernel(%arg0: i32, %arg1: i32, %arg2: memref<16x128xbf16, #tpu.memory_space<vmem>>, %arg3: memref<128x256xbf16, #tpu.memory_space<vmem>>, %arg4: memref<2x9x256xf32, #tpu.memory_space<vmem>>) attributes {dimension_semantics = [#tpu.dimension_semantics<parallel>, #tpu.dimension_semantics<parallel>], iteration_bounds = array<i64: 2, 1>, scalar_prefetch = 0 : i64, scratch_operands = 0 : i64, tpu.core_type = #tpu.core_type<tc>, window_params = [{transform_indices = @transform_0, window_bounds = array<i64: 16, 128>}, {transform_indices = @transform_1, window_bounds = array<i64: 128, 256>}, {transform_indices = @transform_2, window_bounds = array<i64: 2, 9, 256>}]} {
    %c256_i32 = arith.constant 256 : i32
    %0 = arith.muli %arg0, %c256_i32 : i32
    %1 = tpu.iota {dimensions = array<i32: 1>} : vector<1x256xi32>
    %2 = vector.broadcast %0 : i32 to vector<1x256xi32>
    %3 = arith.addi %2, %1 : vector<1x256xi32>
    %c1_i32 = arith.constant 1 : i32
    %4 = vector.broadcast %c1_i32 : i32 to vector<1x256xi32>
    %5 = arith.cmpi eq, %3, %4 : vector<1x256xi32>
    %cst = arith.constant 9.99999984E+17 : f32
    %cst_0 = arith.constant 0xFF800000 : f32
    %6 = vector.broadcast %cst : f32 to vector<1x256xf32>
    %7 = vector.broadcast %cst_0 : f32 to vector<1x256xf32>
    %8 = arith.select %5, %6, %7 : vector<1x256xi1>, vector<1x256xf32>
    %c0 = arith.constant 0 : index
    %c0_1 = arith.constant 0 : index
    %9 = vector.load %arg2[%c0, %c0_1] : memref<16x128xbf16, #tpu.memory_space<vmem>>, vector<16x128xbf16>
    %c0_2 = arith.constant 0 : index
    %c0_3 = arith.constant 0 : index
    %10 = vector.load %arg3[%c0_2, %c0_3] : memref<128x256xbf16, #tpu.memory_space<vmem>>, vector<128x256xbf16>
    %cst_4 = arith.constant dense<0.000000e+00> : vector<16x256xf32>
    %11 = tpu.matmul %9, %10, %cst_4 {dimension_numbers = #tpu.dot_dimension_numbers<[1], [0], [0], [1], [0, 0, 1, 1], [], []>} : vector<16x128xbf16>, vector<128x256xbf16>, vector<16x256xf32> -> vector<16x256xf32>
    %12 = vector.extract_strided_slice %11 {offsets = [0, 0], sizes = [8, 256], strides = [1, 1]} : vector<16x256xf32> to vector<8x256xf32>
    %13 = tpu.concatenate %8, %12 in 0 : vector<1x256xf32>, vector<8x256xf32> -> vector<9x256xf32>
    %c0_5 = arith.constant 0 : index
    %c0_6 = arith.constant 0 : index
    %c0_7 = arith.constant 0 : index
    %14 = vector.load %arg4[%c0_5, %c0_6, %c0_7] : memref<2x9x256xf32, #tpu.memory_space<vmem>>, vector<1x9x256xf32>
    %15 = vector.shape_cast %14 : vector<1x9x256xf32> to vector<9x256xf32>
    %16 = vector.shape_cast %13 : vector<9x256xf32> to vector<1x9x256xf32>
    tpu.vector_store %arg4[%c0_5, %c0_6, %c0_7], %16 {strides = array<i32>} : memref<2x9x256xf32, #tpu.memory_space<vmem>>, vector<1x9x256xf32>,
    %17 = vector.extract_strided_slice %11 {offsets = [8, 0], sizes = [8, 256], strides = [1, 1]} : vector<16x256xf32> to vector<8x256xf32>
    %18 = tpu.concatenate %8, %17 in 0 : vector<1x256xf32>, vector<8x256xf32> -> vector<9x256xf32>
    %c1 = arith.constant 1 : index
    %c0_8 = arith.constant 0 : index
    %c0_9 = arith.constant 0 : index
    %19 = vector.load %arg4[%c1, %c0_8, %c0_9] : memref<2x9x256xf32, #tpu.memory_space<vmem>>, vector<1x9x256xf32>
    %20 = vector.shape_cast %19 : vector<1x9x256xf32> to vector<9x256xf32>
    %21 = vector.shape_cast %18 : vector<9x256xf32> to vector<1x9x256xf32>
    tpu.vector_store %arg4[%c1, %c0_8, %c0_9], %21 {strides = array<i32>} : memref<2x9x256xf32, #tpu.memory_space<vmem>>, vector<1x9x256xf32>,
    return
  }
  func.func @transform_0(%arg0: i32, %arg1: i32) -> (i32, i32) {
    %c0_i32 = arith.constant 0 : i32
    %c0_i32_0 = arith.constant 0 : i32
    return %arg1, %c0_i32 : i32, i32
  }
  func.func @transform_1(%arg0: i32, %arg1: i32) -> (i32, i32) {
    %c0_i32 = arith.constant 0 : i32
    %c0_i32_0 = arith.constant 0 : i32
    return %c0_i32, %arg0 : i32, i32
  }
  func.func @transform_2(%arg0: i32, %arg1: i32) -> (i32, i32, i32) {
    %c0_i32 = arith.constant 0 : i32
    %c0_i32_0 = arith.constant 0 : i32
    return %arg1, %c0_i32, %arg0 : i32, i32, i32
  }
}

</mosaic_0001>

<bundles_post_ra>
// kernel: tpu_custom_call.1
= control target key start
LH: loop header
LB: loop body
LE: loop exit
PB: predicated region body
PF: predicated region fallthrough
CT: control target
= control target key end

     0   :  { %7 = vsyncpa [#allocation3], 0  ;;  %s1014_s0 = inlined_call_operand.hbm [shape: bf16[16,128], index: 0, kind: input, shape index: {}]   ;;  %s1015_s1 = inlined_call_operand.hbm [shape: bf16[128,512], index: 1, kind: input, shape index: {}]   ;;  %s1016_s2 = inlined_call_operand.vmem [shape: f32[2,9,512], index: 2, kind: output, shape index: {}]  }
   0x1   :  { %8 = vsyncpa [#allocation5], 0 }
   0x2   :  { %10 = vsyncpa [#allocation5 + $0x1], 0  ;;  %s792_s9 = smov 0   ;;  %s794_s10 = smov 0  }
   0x3   :  { %s796_s11 = smov 0   ;;  %s798_s12 = smov 0  }
   0x4   :  { %s800_s13 = smov 0   ;;  %s802_s14 = smov 0  }
   0x5 LB: > { %s515_s15 = sadd.s32 4294967295, %s766_s14   ;;  %p68_p0 = scmp.ne.s32.totalorder %s754_s11, %s750_s10  ;;  %s766_s14 = sphi %s802_s14, %s16_s14   ;;  %s762_s13 = sphi %s800_s13, %s1039_s13   ;;  %s758_s12 = sphi %s798_s12, %s1038_s12   ;;  %s754_s11 = sphi %s796_s11, %s1037_s11   ;;  %s750_s10 = sphi %s794_s10, %s1036_s10   ;;  %s746_s9 = sphi %s792_s9, %s1035_s9  }
   0x6   : > { %p69_p1 = scmp.eq.s32.totalorder %s766_s14, 0  ;;  %p74_p2 = scmp.ne.s32.totalorder %s750_s10, %s746_s9 }
   0x7   : > { %p825_p3 = scmp.eq.s32.totalorder %s515_s15, 0  ;;  %p100_p4 = scmp.eq.s32.totalorder %s515_s15, 1 }
   0x8   : > { %p70_p5 = por %p69_p1, %p68_p0  ;;  %p517_p6 = scmp.ge.s32.totalorder %s766_s14, 1 }
   0x9   : > { %s1022_s16 = scalar_select %p825_p3, 1, 0 }
   0xa   : > { %p832_p7 = por %p825_p3, %p74_p2  ;;  %p836_p8 = por %p100_p4, %p68_p0 }
   0xb   : > { %p113_p9 = scmp.lt.s32.totalorder %s766_s14, 3  ;;  %s768_s20 = smov [#allocation2]  }
   0xc   : > { %s1023_s17 = scalar_select %p832_p7, 1, 0 }
   0xd   : > { %s1024_s18 = scalar_select %p836_p8, 1, 0 }
   0xe   : > { %p841_p10 = pnand %p517_p6, %p113_p9  ;;  %s128_s21 = sshll.u32 %s768_s20, 4  ;;  %s845_s21 = int_to_ptr.vmem [resolvable:$true] %s128_s21 }
   0xf   : > { %p571_p12 = scmp.lt.s32.totalorder %s766_s14, 2  ;;  %s28_s24 = sadd.s32 1, %s762_s13 }
  0x10   : > { %s1025_s19 = scalar_select %p841_p10, 1, 0 }
  0x11   : > { %p562_p11 = pneg %p841_p10  ;;  %p856_p0 = pnand %p571_p12, %p70_p5 }
  0x12   : > { %p861_p1 = scmp.ge.s32.totalorder %s28_s24, 2  ;;  %s654_s28 = scalar_lea.hbm %s1014_s0, 128 }
  0x13   : > { %p852_p13 = pnand %p562_p11, %p825_p3  ;;  %p655_p2 = scmp.ne.s32.totalorder %s1014_s0, %s654_s28 }
  0x14   : > { %s1027_s23 = scalar_select %p856_p0, 1, 0 }
  0x15   : > { %s1028_s25 = scalar_select %p861_p1, 1, 0 }
  0x16   : > { %p656_p4 = pneg %p852_p13  ;;  %p661_p9 = scmp.lt.u32.totalorder %s654_s28, %s1014_s0 }
  0x18   : > { %p657_p6 = pnand %p656_p4, %p655_p2 }
  0x1a   : > { %p658_p5 = pneg %p657_p6 }
  0x1c   : > { %p663_p11 = pnand %p661_p9, %p658_p5 }
  0x1e   : > { %666 = shalt.err (!%p663_p11)
}
  0x1f   : > { %s667_s5 = scalar_lea.vmem %s845_s21, 128  ;;  %p675_p3 = scmp.lt.s32.totalorder %s845_s21, %s845_s21 }
  0x20   : > { %p668_p12 = scmp.ne.s32.totalorder %s845_s21, %s667_s5  ;;  %p676_p10 = scmp.lt.s32.totalorder %s667_s5, %s667_s5 }
  0x22   : > { %p670_p8 = pnand %p668_p12, %p656_p4  ;;  %p677_p0 = por %p676_p10, %p675_p3 }
  0x24   : > { %p671_p7 = pneg %p670_p8 }
  0x26   : > { %p678_p1 = pnand %p677_p0, %p671_p7 }
  0x28   : > { %681 = shalt.err (!%p678_p1)
}
  0x29   : > { %s769_s6 = smov 64   ;;  %s770_s7 = smov 4  }
  0x2a   : > { %565 = dma.hbm_to_vmem [thread:$0]  (!%p852_p13), %s1014_s0, 128, %s845_s21, [#allocation3], %s769_s6, %s769_s6, %s770_s7  }
  0x2b   : > { %s61_s15 = sadd.s32 1, %s754_s11  ;;  %p1029_p3 = scmp.ne.s32.totalorder %s1028_s25, 0 }
  0x2c   : > { %s142_s20 = sand.u32 1, %s754_s11   ;;  %s554_s26 = sshll.u32 %s762_s13, 7 }
  0x2d   : > { %s1041_s24 = smov (%p1029_p3, %s28_s24), 0  ;;  %s520_s28 = sshll.u32 %s142_s20, 7 }
  0x2e   : > { %s58_s27 = ssub.s32 %s762_s13, %s1041_s24  ;;  %s898_s22 = scalar_lea.hbm %s1015_s1, %s554_s26 }
  0x2f   : > { %p59_p7 = scmp.eq.s32.totalorder %s58_s27, 0  ;;  %s146_s25 = scalar_lea.vmem [#allocation4], %s520_s28 }
  0x30   : > { %s153_s3 = sshll.u32 %s146_s25, 4  ;;  %s905_s4 = scalar_lea.sflag [#allocation5], %s142_s20  ;;  %s903_s3 = int_to_ptr.vmem [resolvable:$true] %s153_s3 }
  0x31   : > { %s901_s21 = scalar_select %p59_p7, %s754_s11, %s61_s15  }
  0x32   : > { %s682_s5 = scalar_lea.hbm %s898_s22, 2048  ;;  %p1030_p10 = scmp.ne.s32.totalorder %s1027_s23, 0 }
  0x33   : > { %p683_p8 = scmp.ne.s32.totalorder %s898_s22, %s682_s5  ;;  %s687_s8 = scalar_lea.hbm %s1015_s1, 4096 }
  0x34   : > { %p684_p13 = pneg %p1030_p10  ;;  %p688_p2 = scmp.lt.u32.totalorder %s898_s22, %s1015_s1 }
  0x35   : > { %p689_p4 = scmp.lt.u32.totalorder %s687_s8, %s682_s5  ;;  %p691_p5 = scmp.lt.u32.totalorder %s682_s5, %s898_s22 }
  0x36   : > { %p685_p0 = pnand %p684_p13, %p683_p8 }
  0x37   : > { %p690_p6 = por %p689_p4, %p688_p2 }
  0x38   : > { %p686_p1 = pneg %p685_p0 }
  0x39   : > { %p692_p9 = por %p691_p5, %p690_p6 }
  0x3b   : > { %p693_p11 = pnand %p692_p9, %p686_p1 }
  0x3d   : > { %696 = shalt.err (!%p693_p11)
}
  0x3e   : > { %s697_s20 = scalar_lea.vmem %s903_s3, 2048  ;;  %s771_s26 = smov [#allocation4]  }
  0x3f   : > { %p698_p12 = scmp.ne.s32.totalorder %s903_s3, %s697_s20  ;;  %s702_s27 = sshll.u32 %s771_s26, 4  ;;  %s703_s27 = int_to_ptr.vmem [resolvable:$false] %s702_s27 }
  0x40   : > { %s704_s28 = scalar_lea.vmem %s703_s27, 4096  ;;  %p705_p8 = scmp.lt.s32.totalorder %s903_s3, %s703_s27 }
  0x41   : > { %p700_p3 = pnand %p698_p12, %p684_p13  ;;  %p706_p0 = scmp.lt.s32.totalorder %s704_s28, %s697_s20 }
  0x43   : > { %p701_p7 = pneg %p700_p3  ;;  %p707_p2 = por %p706_p0, %p705_p8 }
  0x45   : > { %p708_p4 = pnand %p707_p2, %p701_p7 }
  0x47   : > { %711 = shalt.err (!%p708_p4)
}
  0x48   : > { %s772_s29 = smov 256   ;;  %s773_s30 = smov 128  }
  0x49   : > { %s774_s25 = smov 8   ;;  %p1031_p13 = scmp.ne.s32.totalorder %s1025_s19, 0 }
  0x4a   : > { %569 = dma.hbm_to_vmem [thread:$0]  (!%p1030_p10), %s898_s22, 2048, %s903_s3, %s905_s4, %s772_s29, %s773_s30, %s774_s25  }
  0x4b   : > { %165 = sbr.rel (%p1031_p13) target bundleno = 347 (0x15b), region = 28  ;;  %p1032_p1 = scmp.ne.s32.totalorder (!%p1031_p13), %s1022_s16, 0 }
  0x52   : > { %737 = dma.done.wait (%p1032_p1), [#allocation3], 128  }
  0x53   : > { %739 = vsyncadd (%p1032_p1), [#allocation3], 4294967168  ;;  %s940_s5 = sand.u32 1, %s750_s10   ;;  %p1033_p10 = scmp.ne.s32.totalorder %s1023_s17, 0 }
  0x54   : > { %s525_s6 = sshll.u32 %s940_s5, 7  ;;  %s172_s7 = scalar_lea.sflag [#allocation5], %s940_s5 }
  0x55   : > { %s944_s8 = scalar_lea.vmem [#allocation4], %s525_s6 }
  0x56   : > { %741 = dma.done.wait (%p1033_p10), %s172_s7, 2048  }
  0x57   : > { %743 = vsyncadd (%p1033_p10), %s172_s7, 4294965248  ;;  %v775_v0 = vmov 0   ;;  %v629_v1 = vld [vmem:[%s944_s8 + $0x4] ss:$8 sps:$4 sm:$0xff]   ;;  %v631_v2 = vld [vmem:[%s944_s8] ss:$8 sps:$4 sm:$0xff]   ;;  %v201_v18 = vlaneseq }
  0x58   : > { %347 = vmatprep.mubr.bf16.mxu0 %v775_v0  ;;  %315 = vmatprep.subr.bf16.mxu0 %v629_v1  ;;  %v632_v3 = vld [vmem:[%s944_s8 + $0x14] ss:$8 sps:$4 sm:$0xff]   ;;  %v634_v4 = vld [vmem:[%s944_s8 + $0x10] ss:$8 sps:$4 sm:$0xff]   ;;  %v635_v5 = vld [vmem:[%s944_s8 + $0x24] ss:$8 sps:$4 sm:$0xff]  }
  0x59   : > { %316 = vmatpush1.bf16.msra.mxu0 %v631_v2  ;;  %v637_v6 = vld [vmem:[%s944_s8 + $0x20] ss:$8 sps:$4 sm:$0xff]   ;;  %v638_v7 = vld [vmem:[%s944_s8 + $0x34] ss:$8 sps:$4 sm:$0xff]   ;;  %v640_v8 = vld [vmem:[%s944_s8 + $0x30] ss:$8 sps:$4 sm:$0xff]  }
  0x5a   : > { %317 = vmatprep.subr.bf16.mxu0 %v632_v3  ;;  %v641_v9 = vld [vmem:[%s944_s8 + $0x44] ss:$8 sps:$4 sm:$0xff]   ;;  %v643_v10 = vld [vmem:[%s944_s8 + $0x40] ss:$8 sps:$4 sm:$0xff]   ;;  %v644_v11 = vld [vmem:[%s944_s8 + $0x54] ss:$8 sps:$4 sm:$0xff]  }
  0x5b   : > { %v646_v12 = vld [vmem:[%s944_s8 + $0x50] ss:$8 sps:$4 sm:$0xff]   ;;  %v647_v13 = vld [vmem:[%s944_s8 + $0x64] ss:$8 sps:$4 sm:$0xff]   ;;  %v649_v14 = vld [vmem:[%s944_s8 + $0x60] ss:$8 sps:$4 sm:$0xff]  }
  0x5c   : > { %v650_v15 = vld [vmem:[%s944_s8 + $0x74] ss:$8 sps:$4 sm:$0xff]   ;;  %v652_v16 = vld [vmem:[%s944_s8 + $0x70] ss:$8 sps:$4 sm:$0xff]   ;;  %v202_v19 = vand.u32 127, %v201_v18  ;;  %s527_s16 = sshll.u32 %s758_s12, 8 }
  0x5d   : > { %318 = vmatpush1.bf16.msra.mxu0 %v634_v4  ;;  %v653_v17 = vld [vmem:[#allocation2] sm:$0xff]   ;;  %v204_v20 = vstv %s527_s16  ;;  %s526_s17 = sshll.u32 %s940_s5, 6  ;;  %v776_v24 = vmov -inf   ;;  %vm364_vm2 = vcmask 1040384   ;;  %p1034_p6 = scmp.ne.s32.totalorder %s1024_s18, 0 }
  0x5e   : > { %319 = vmatprep.subr.bf16.mxu0 %v635_v5  ;;  %v203_v21 = vadd.s32 128, %v202_v19  ;;  %v205_v22 = vadd.s32 %v204_v20, %v202_v19  ;;  %s969_s19 = scalar_lea.vmem [#allocation6], %s526_s17  ;;  %s555_s23 = sshll.u32 (%p1034_p6), %s758_s12, 4 }
  0x5f   : > { %s396_s4 = scalar_lea.vmem (%p1034_p6), %s1016_s2, %s555_s23 }
  0x60   : > { %v206_v23 = vadd.s32 %v204_v20, %v203_v21  ;;  %vm207_vm0 = vcmp.eq.s32.totalorder %v205_v22, 1 }
  0x61   : > { %320 = vmatpush1.bf16.msra.mxu0 %v637_v6  ;;  %v209_v25 = vsel %vm207_vm0, 1e+18, %v776_v24 }
  0x62   : > { %321 = vmatprep.subr.bf16.mxu0 %v638_v7  ;;  %vm208_vm1 = vcmp.eq.s32.totalorder %v206_v23, 1 }
  0x63   : > { %v210_v28 = vsel %vm208_vm1, 1e+18, %v776_v24 }
  0x65   : > { %322 = vmatpush1.bf16.msra.mxu0 %v640_v8 }
  0x66   : > { %323 = vmatprep.subr.bf16.mxu0 %v641_v9 }
  0x69   : > { %324 = vmatpush1.bf16.msra.mxu0 %v643_v10 }
  0x6a   : > { %325 = vmatprep.subr.bf16.mxu0 %v644_v11 }
  0x6d   : > { %326 = vmatpush1.bf16.msra.mxu0 %v646_v12 }
  0x6e   : > { %327 = vmatprep.subr.bf16.mxu0 %v647_v13 }
  0x71   : > { %328 = vmatpush1.bf16.msra.mxu0 %v649_v14 }
  0x72   : > { %329 = vmatprep.subr.bf16.mxu0 %v650_v15 }
  0x75   : > { %330 = vmatpush1.bf16.msra.mxu0 %v652_v16 }
  0x78   : > { %348 = vmatmul.mubr.bf16.vlgmr.msra.gmra.mrb[0].mxu0 %v653_v17 }
 0x14b   : > { %v349_v26 = vpop.f32.mrb[0].mxu0 }
 0x14c   : > { %v360_v27 = vrot.slane %v349_v26, 7  ;;  %v351_v29 = vpop.f32.mrb[1].mxu0  ;;  %390 = sbr.rel (!%p1034_p6) target bundleno = 347 (0x15b), region = 40 }
 0x14d   : > { %v361_v30 = vrot.slane %v351_v29, 7  ;;  %v353_v31 = vpop.f32.mrb[2].mxu0 }
 0x14e   : > { %v365_v32 = vsel %vm364_vm2, %v209_v25, %v360_v27  ;;  %369 = vst [vmem:[%s969_s19 + $0x10] sm:$0x1] %v360_v27  ;;  %v373_v33 = vrot.slane %v353_v31, 7  ;;  %v355_v34 = vpop.f32.mrb[3].mxu0 }
 0x14f   : > { %367 = vst [vmem:[%s969_s19] sm:$0xff] %v365_v32  ;;  %v366_v35 = vsel %vm364_vm2, %v210_v28, %v361_v30  ;;  %370 = vst [vmem:[%s969_s19 + $0x18] sm:$0x1] %v361_v30  ;;  %v374_v36 = vrot.slane %v355_v34, 7 }
 0x150   : > { %368 = vst [vmem:[%s969_s19 + $0x8] sm:$0xff] %v366_v35  ;;  %v377_v37 = vsel %vm364_vm2, %v209_v25, %v373_v33  ;;  %547 = vst [vmem:[%s969_s19 + $0x30] sm:$0x1] %v373_v33 }
 0x151   : > { %545 = vst [vmem:[%s969_s19 + $0x20] sm:$0xff] %v377_v37  ;;  %v378_v38 = vsel %vm364_vm2, %v210_v28, %v374_v36  ;;  %548 = vst [vmem:[%s969_s19 + $0x38] sm:$0x1] %v374_v36 }
 0x152   : > { %546 = vst [vmem:[%s969_s19 + $0x28] sm:$0xff] %v378_v38 }
 0x155   : > { %v413_v41 = vld [vmem:[%s969_s19 + $0x10] sm:$0xff] }
 0x156   : > { %v409_v39 = vld [vmem:[%s969_s19] sm:$0xff]  ;;  %v415_v42 = vld [vmem:[%s969_s19 + $0x18] sm:$0xff]  ;;  %414 = vst [vmem:[%s396_s4 + $0x20] sm:$0xff] %v413_v41 }
 0x157   : > { %v411_v40 = vld [vmem:[%s969_s19 + $0x8] sm:$0xff]  ;;  %410 = vst [vmem:[%s396_s4] sm:$0xff] %v409_v39  ;;  %416 = vst [vmem:[%s396_s4 + $0x28] sm:$0xff] %v415_v42  ;;  %v421_v45 = vld [vmem:[%s969_s19 + $0x30] sm:$0xff] }
 0x158   : > { %v417_v43 = vld [vmem:[%s969_s19 + $0x20] sm:$0xff]  ;;  %412 = vst [vmem:[%s396_s4 + $0x8] sm:$0xff] %v411_v40  ;;  %v423_v46 = vld [vmem:[%s969_s19 + $0x38] sm:$0xff]  ;;  %422 = vst [vmem:[%s396_s4 + $0x60] sm:$0xff] %v421_v45 }
 0x159   : > { %v419_v44 = vld [vmem:[%s969_s19 + $0x28] sm:$0xff]  ;;  %418 = vst [vmem:[%s396_s4 + $0x40] sm:$0xff] %v417_v43  ;;  %424 = vst [vmem:[%s396_s4 + $0x68] sm:$0xff] %v423_v46 }
 0x15a   : > { %420 = vst [vmem:[%s396_s4 + $0x48] sm:$0xff] %v419_v44 }
 0x15b PF: > { %s16_s14 = sadd.s32 1, %s766_s14   ;;  %s1035_s9 = smov %s750_s10 }
 0x15c   : > { %p13_p5 = scmp.ge.s32.totalorder %s16_s14, 4   ;;  %s1036_s10 = smov %s754_s11 }
 0x15d   : > { %s1037_s11 = smov %s901_s21  ;;  %s1038_s12 = smov %s762_s13 }
 0x15e   : > { %s1039_s13 = smov %s1041_s24  ;;  %15 = sbr.rel (!%p13_p5) target bundleno = 5 (0x5), region = 98 }
 0x165   :  { %440 = vsyncpa [#allocation3], 1 }
 0x166   :  { %442 = vsyncpa [#allocation3 + $0x1], 1 }
 0x167   :  { %443 = vsyncpa [#allocation5], 1 }
 0x168   :  { %445 = vsyncpa [#allocation5 + $0x1], 1 }

</bundles_post_ra>
